<compile_context>
chip_gen: v6e
topology: v6e:2x2x1
jax: 0.10.0
libtpu: 0.0.40
codegen_flags: <defaults>
</compile_context>

<pallas_src>
import functools

import jax
import jax.numpy as jnp
from jax.experimental import pallas as pl
from jax.experimental.pallas import tpu as pltpu


def _per_sample_loss(pred_ref, tgt_ref, abc_ref, w_ref, *, batch, use_mixup):
    """Masked per-sample loss for one lane-dense batch tile.

    Layout: classes on sublanes (size C), batch tile on the 128-lane axis.
    Returns a (1, TB) f32 vector; lanes beyond the true batch size are zero.
    """
    i = pl.program_id(0)
    pred = pred_ref[...].astype(jnp.float32)                # (C, TB), f32 math (v5e-safe)
    C, TB = pred.shape

    # Folded mixup + label-smoothing scalars (SMEM):
    #   a = (1-s)*lam,  b = (1-s)*(1-lam),  c = s/C.
    a = abc_ref[0, 0]
    c = abc_ref[0, 2]

    # Targets via sublane-iota compare against scalar constants (no bool casts).
    cls = jax.lax.broadcasted_iota(jnp.int32, (C, TB), 0)
    tgt = jnp.where(cls == tgt_ref[0:1, :], a, 0.0) + c     # (C, TB)
    if use_mixup:
        b = abc_ref[0, 1]
        tgt = tgt + jnp.where(cls == tgt_ref[1:2, :], b, 0.0)

    # log_softmax over the class (sublane) axis.  Softmax is per-lane, so any
    # garbage in the padded lanes of a partial last tile cannot contaminate
    # valid lanes; the final mask below zeroes those lanes.
    m = jnp.max(pred, axis=0, keepdims=True)                # (1, TB)
    shifted = pred - m
    lse = jnp.log(jnp.sum(jnp.exp(shifted), axis=0, keepdims=True))
    log_probs = shifted - lse                               # (C, TB)

    # Weighted NLL summed over classes (C-deep sublane reduction).
    loss = (tgt * log_probs) * w_ref[...]                   # w_ref (C,1) lane-broadcast
    per_sample = -jnp.sum(loss, axis=0, keepdims=True)      # (1, TB)

    lane = jax.lax.broadcasted_iota(jnp.int32, (1, TB), 1)
    valid = (i * TB + lane) < batch
    return jnp.where(valid, per_sample, 0.0)


def _bce_partial_kernel(pred_ref, tgt_ref, abc_ref, w_ref, out_ref, *,
                        batch, use_mixup):
    """mean/sum: each tile writes its partial sum to lane 0 of a (1,128) block."""
    per_sample = _per_sample_loss(pred_ref, tgt_ref, abc_ref, w_ref,
                                  batch=batch, use_mixup=use_mixup)
    s = jnp.sum(per_sample)                                 # f32 scalar (XLU lane reduce)
    lane = jax.lax.broadcasted_iota(jnp.int32, (1, 128), 1)
    out_ref[...] = jnp.where(lane == 0, s, 0.0)


def _bce_none_kernel(pred_ref, tgt_ref, abc_ref, w_ref, out_ref, *,
                     batch, use_mixup):
    """'none': write lane-dense per-sample losses per tile."""
    out_ref[...] = _per_sample_loss(pred_ref, tgt_ref, abc_ref, w_ref,
                                    batch=batch, use_mixup=use_mixup)


def balanced_cross_entropy_loss(pred, target, target_b=None, lam=None, *,
                                num_classes=5, smoothing=0.1,
                                class_weights=None, reduction='mean',
                                batch_tile=32768, pred_transposed=False):
    """Forward pass of BalancedCrossEntropyLoss.

    pred: (B, C) logits, or (C, B) if pred_transposed=True (avoids the extra
    XLA transpose / HBM pass).
    """
    if pred_transposed:
        pred_t = pred                                       # already lane-dense (C, B)
        C, B = pred.shape
    else:
        # TODO(synk): produce logits transposed upstream / fuse into the
        # producing matmul to avoid this extra HBM read+write of the logits.
        pred_t = pred.T                                     # (C, B), native dtype
        B, C = pred.shape
    assert C == num_classes

    if class_weights is None:
        w = jnp.ones((C, 1), jnp.float32)
    else:
        w = jnp.asarray(class_weights, jnp.float32).reshape(C, 1)

    # Compile-time specialization of the no-mixup path.
    use_mixup = (target_b is not None) and (lam is not None)
    if use_mixup:
        tgt_stack = jnp.stack(
            [jnp.asarray(target, jnp.int32).reshape(B),
             jnp.asarray(target_b, jnp.int32).reshape(B)], axis=0)   # (2, B)
        lam_f = jnp.asarray(lam, jnp.float32)
    else:
        tgt_stack = jnp.asarray(target, jnp.int32).reshape(1, B)     # (1, B)
        lam_f = jnp.float32(1.0)
    R = tgt_stack.shape[0]

    # Folded mixup + smoothing scalars, passed through SMEM (no recompile when
    # lam changes per training step).
    s = float(smoothing)
    a_s = (1.0 - s) * lam_f
    b_s = (1.0 - s) * (1.0 - lam_f)
    c_s = jnp.float32(s / C)
    abc = jnp.stack([a_s, b_s, c_s]).reshape(1, 3).astype(jnp.float32)

    # Batch tile (lane dim): multiple of 128, capped by the padded batch size
    # and by a VMEM-safe maximum (double-buffered pred + targets + out blocks).
    b_padded = ((B + 127) // 128) * 128
    TB = max(128, (int(batch_tile) // 128) * 128)
    TB = min(TB, b_padded)
    TB = min(TB, 128 * 1024)                # ~16-24 MiB double-buffered at this size
    num_tiles = pl.cdiv(B, TB)

    in_specs = [
        pl.BlockSpec((C, TB), lambda i: (0, i)),                  # pred^T tile
        pl.BlockSpec((R, TB), lambda i: (0, i)),                  # stacked targets tile
        pl.BlockSpec(memory_space=pltpu.MemorySpace.SMEM),        # (1,3) folded scalars
        pl.BlockSpec((C, 1), lambda i: (0, 0)),                   # class weights (resident)
    ]

    scalar_out = reduction in ('mean', 'sum')
    if scalar_out:
        kernel = functools.partial(_bce_partial_kernel, batch=B, use_mixup=use_mixup)
        # Lane-dense per-tile partial sums; tiny final reduce in the wrapper.
        out_shape = jax.ShapeDtypeStruct((1, 128 * num_tiles), jnp.float32)
        out_spec = pl.BlockSpec((1, 128), lambda i: (0, i))
    else:
        kernel = functools.partial(_bce_none_kernel, batch=B, use_mixup=use_mixup)
        out_shape = jax.ShapeDtypeStruct((1, B), jnp.float32)
        out_spec = pl.BlockSpec((1, TB), lambda i: (0, i))

    out = pl.pallas_call(
        kernel,
        out_shape=out_shape,
        grid_spec=pltpu.PrefetchScalarGridSpec(
            num_scalar_prefetch=0,
            grid=(num_tiles,),
            in_specs=in_specs,
            out_specs=out_spec,
        ),
        compiler_params=pltpu.CompilerParams(
            # All tiles are independent -> parallel on every path (2-TC on v7x).
            dimension_semantics=("parallel",),
            # Explicit scoped-VMEM limit so large tiles compile on v5e (16 MiB
            # default) and v6e (32 MiB default) while staying under v7x's
            # 64 MiB physical.
            vmem_limit_bytes=48 * 1024 * 1024,
        ),
    )(pred_t, tgt_stack, abc, w)

    if scalar_out:
        total = jnp.sum(out)                 # num_tiles non-zero lanes, trivial XLA reduce
        if reduction == 'mean':
            return total / B                 # divide by GLOBAL batch
        return total
    return out[0, :]


def _reference(pred, target, target_b, lam, *, smoothing, class_weights, reduction):
    """Pure-JAX mirror of the PyTorch forward."""
    C = pred.shape[1]
    pred = pred.astype(jnp.float32)
    t = jax.nn.one_hot(target, C, dtype=jnp.float32)
    if target_b is not None and lam is not None:
        t_b = jax.nn.one_hot(target_b, C, dtype=jnp.float32)
        t = lam * t + (1.0 - lam) * t_b
    t = (1.0 - smoothing) * t + smoothing / C
    log_probs = jax.nn.log_softmax(pred, axis=1)
    w = (jnp.asarray(class_weights, jnp.float32) if class_weights is not None
         else jnp.ones((C,), jnp.float32))
    loss = jnp.sum(-(t * log_probs) * w[None, :], axis=1)
    if reduction == 'mean':
        return loss.mean()
    if reduction == 'sum':
        return loss.sum()
    return loss


if __name__ == "__main__":
    key = jax.random.PRNGKey(0)
    B, C = 200, 5                       # B not a multiple of 128 -> exercises masking
    k1, k2, k3 = jax.random.split(key, 3)

    pred = jax.random.normal(k1, (B, C), dtype=jnp.float32)
    target = jax.random.randint(k2, (B,), 0, C, dtype=jnp.int32)
    target_b = jax.random.randint(k3, (B,), 0, C, dtype=jnp.int32)
    lam = 0.7
    smoothing = 0.1
    class_weights = jnp.array([1.0, 2.0, 0.5, 1.5, 1.0], dtype=jnp.float32)

    # 1) mean reduction, mixup, small batch_tile -> multi-tile grid
    #    (128-lane tile + partial 72-lane tile) exercising the parallel
    #    partial-sum path and lane masking.
    loss = balanced_cross_entropy_loss(
        pred, target, target_b, lam, num_classes=C, smoothing=smoothing,
        class_weights=class_weights, reduction='mean', batch_tile=128)
    jax.block_until_ready(loss)
    ref = _reference(pred, target, target_b, lam, smoothing=smoothing,
                     class_weights=class_weights, reduction='mean')
    assert jnp.allclose(loss, ref, atol=2e-5, rtol=2e-5), (loss, ref)

    # 2) sum reduction (default large batch_tile -> single tile here).
    loss_s = balanced_cross_entropy_loss(
        pred, target, target_b, lam, num_classes=C, smoothing=smoothing,
        class_weights=class_weights, reduction='sum')
    ref_s = _reference(pred, target, target_b, lam, smoothing=smoothing,
                       class_weights=class_weights, reduction='sum')
    assert jnp.allclose(loss_s, ref_s, atol=1e-3, rtol=2e-5), (loss_s, ref_s)

    # 3) 'none' reduction (lane-dense per-sample output).
    loss_n = balanced_cross_entropy_loss(
        pred, target, target_b, lam, num_classes=C, smoothing=smoothing,
        class_weights=class_weights, reduction='none', batch_tile=128)
    ref_n = _reference(pred, target, target_b, lam, smoothing=smoothing,
                       class_weights=class_weights, reduction='none')
    assert loss_n.shape == (B,)
    assert jnp.allclose(loss_n, ref_n, atol=2e-5, rtol=2e-5), (loss_n, ref_n)

    # 4) no-mixup path (compile-time specialized: single target stream).
    loss_p = balanced_cross_entropy_loss(
        pred, target, num_classes=C, smoothing=smoothing,
        class_weights=class_weights, reduction='mean')
    ref_p = _reference(pred, target, None, None, smoothing=smoothing,
                       class_weights=class_weights, reduction='mean')
    assert jnp.allclose(loss_p, ref_p, atol=2e-5, rtol=2e-5), (loss_p, ref_p)

    # 5) bf16 logits passed natively AND already transposed (C, B), skipping the
    #    wrapper-side pred.T HBM pass; cast to f32 inside the kernel.
    pred_bf16 = pred.astype(jnp.bfloat16)
    loss_b = balanced_cross_entropy_loss(
        pred_bf16.T, target, target_b, lam, num_classes=C, smoothing=smoothing,
        class_weights=class_weights, reduction='mean', pred_transposed=True)
    ref_b = _reference(pred_bf16, target, target_b, lam, smoothing=smoothing,
                       class_weights=class_weights, reduction='mean')
    assert jnp.allclose(loss_b, ref_b, atol=1e-4, rtol=1e-4), (loss_b, ref_b)

    jax.block_until_ready(loss_b)
    print("KERNEL_OK")
</pallas_src>

<mosaic_0001>
module attributes {stable_mosaic.version = 11 : i64} {
  func.func @_bce_partial_kernel(%arg0: i32, %arg1: memref<5x128xf32, #tpu.memory_space<vmem>>, %arg2: memref<2x128xi32, #tpu.memory_space<vmem>>, %arg3: memref<1x3xf32, #tpu.memory_space<smem>>, %arg4: memref<5x1xf32, #tpu.memory_space<vmem>>, %arg5: memref<1x128xf32, #tpu.memory_space<vmem>>) attributes {dimension_semantics = [#tpu.dimension_semantics<parallel>], iteration_bounds = array<i64: 2>, scalar_prefetch = 0 : i64, scratch_operands = 0 : i64, tpu.core_type = #tpu.core_type<tc>, window_params = [{transform_indices = @transform_0, window_bounds = array<i64: 5, 128>}, {transform_indices = @transform_1, window_bounds = array<i64: 2, 128>}, {transform_indices = @transform_2, window_bounds = array<i64: 1, 3>}, {pipeline_mode = #tpu.pipeline_mode<synchronous>, transform_indices = @transform_3, window_bounds = array<i64: 5, 1>}, {transform_indices = @transform_4, window_bounds = array<i64: 1, 128>}]} {
    %c0 = arith.constant 0 : index
    %c0_0 = arith.constant 0 : index
    %0 = vector.load %arg1[%c0, %c0_0] : memref<5x128xf32, #tpu.memory_space<vmem>>, vector<5x128xf32>
    %c0_1 = arith.constant 0 : index
    %c0_2 = arith.constant 0 : index
    %1 = memref.load %arg3[%c0_1, %c0_2] : memref<1x3xf32, #tpu.memory_space<smem>>
    %c0_3 = arith.constant 0 : index
    %c2 = arith.constant 2 : index
    %2 = memref.load %arg3[%c0_3, %c2] : memref<1x3xf32, #tpu.memory_space<smem>>
    %3 = tpu.iota {dimensions = array<i32: 0>} : vector<5x128xi32>
    %c0_4 = arith.constant 0 : index
    %c0_5 = arith.constant 0 : index
    %4 = vector.load %arg2[%c0_4, %c0_5] : memref<2x128xi32, #tpu.memory_space<vmem>>, vector<1x128xi32>
    %5 = vector.broadcast %4 : vector<1x128xi32> to vector<5x128xi32>
    %6 = arith.cmpi eq, %3, %5 : vector<5x128xi32>
    %cst = arith.constant 0.000000e+00 : f32
    %7 = vector.broadcast %1 : f32 to vector<5x128xf32>
    %8 = vector.broadcast %cst : f32 to vector<5x128xf32>
    %9 = arith.select %6, %7, %8 : vector<5x128xi1>, vector<5x128xf32>
    %10 = vector.broadcast %2 : f32 to vector<5x128xf32>
    %11 = arith.addf %9, %10 : vector<5x128xf32>
    %c0_6 = arith.constant 0 : index
    %c1 = arith.constant 1 : index
    %12 = memref.load %arg3[%c0_6, %c1] : memref<1x3xf32, #tpu.memory_space<smem>>
    %c1_7 = arith.constant 1 : index
    %c0_8 = arith.constant 0 : index
    %13 = vector.load %arg2[%c1_7, %c0_8] : memref<2x128xi32, #tpu.memory_space<vmem>>, vector<1x128xi32>
    %14 = vector.broadcast %13 : vector<1x128xi32> to vector<5x128xi32>
    %15 = arith.cmpi eq, %3, %14 : vector<5x128xi32>
    %cst_9 = arith.constant 0.000000e+00 : f32
    %16 = vector.broadcast %12 : f32 to vector<5x128xf32>
    %17 = vector.broadcast %cst_9 : f32 to vector<5x128xf32>
    %18 = arith.select %15, %16, %17 : vector<5x128xi1>, vector<5x128xf32>
    %19 = arith.addf %11, %18 : vector<5x128xf32>
    %cst_10 = arith.constant dense<0xFF800000> : vector<128xf32>
    %20 = vector.multi_reduction <maximumf>, %0, %cst_10 [0] : vector<5x128xf32> to vector<128xf32>
    %21 = vector.shape_cast %20 : vector<128xf32> to vector<1x128xf32>
    %22 = vector.broadcast %21 : vector<1x128xf32> to vector<5x128xf32>
    %23 = arith.subf %0, %22 : vector<5x128xf32>
    %24 = math.exp %23 : vector<5x128xf32>
    %cst_11 = arith.constant dense<0.000000e+00> : vector<128xf32>
    %25 = vector.multi_reduction <add>, %24, %cst_11 [0] : vector<5x128xf32> to vector<128xf32>
    %26 = vector.shape_cast %25 : vector<128xf32> to vector<1x128xf32>
    %27 = math.log %26 : vector<1x128xf32>
    %28 = vector.broadcast %27 : vector<1x128xf32> to vector<5x128xf32>
    %29 = arith.subf %23, %28 : vector<5x128xf32>
    %30 = arith.mulf %19, %29 : vector<5x128xf32>
    %c0_12 = arith.constant 0 : index
    %c0_13 = arith.constant 0 : index
    %31 = vector.load %arg4[%c0_12, %c0_13] : memref<5x1xf32, #tpu.memory_space<vmem>>, vector<5x1xf32>
    %32 = vector.broadcast %31 : vector<5x1xf32> to vector<5x128xf32>
    %33 = arith.mulf %30, %32 : vector<5x128xf32>
    %cst_14 = arith.constant dense<0.000000e+00> : vector<128xf32>
    %34 = vector.multi_reduction <add>, %33, %cst_14 [0] : vector<5x128xf32> to vector<128xf32>
    %35 = vector.shape_cast %34 : vector<128xf32> to vector<1x128xf32>
    %cst_15 = arith.constant 0.000000e+00 : f32
    %36 = vector.broadcast %cst_15 : f32 to vector<1x128xf32>
    %37 = arith.subf %36, %35 : vector<1x128xf32>
    %38 = tpu.iota {dimensions = array<i32: 1>} : vector<1x128xi32>
    %c128_i32 = arith.constant 128 : i32
    %39 = arith.muli %arg0, %c128_i32 : i32
    %40 = vector.broadcast %39 : i32 to vector<1x128xi32>
    %41 = arith.addi %40, %38 : vector<1x128xi32>
    %c200_i32 = arith.constant 200 : i32
    %42 = vector.broadcast %c200_i32 : i32 to vector<1x128xi32>
    %43 = arith.cmpi slt, %41, %42 : vector<1x128xi32>
    %cst_16 = arith.constant 0.000000e+00 : f32
    %44 = vector.broadcast %cst_16 : f32 to vector<1x128xf32>
    %45 = arith.select %43, %37, %44 : vector<1x128xi1>, vector<1x128xf32>
    %46 = vector.shape_cast %45 : vector<1x128xf32> to vector<1x1x128xf32>
    %cst_17 = arith.constant dense<0.000000e+00> : vector<1xf32>
    %47 = vector.multi_reduction <add>, %46, %cst_17 [1, 2] : vector<1x1x128xf32> to vector<1xf32>
    %48 = vector.shape_cast %47 : vector<1xf32> to vector<1x1x1xf32>
    %49 = vector.extract %48[0, 0, 0] : f32 from vector<1x1x1xf32>
    %50 = tpu.iota {dimensions = array<i32: 1>} : vector<1x128xi32>
    %c0_i32 = arith.constant 0 : i32
    %51 = vector.broadcast %c0_i32 : i32 to vector<1x128xi32>
    %52 = arith.cmpi eq, %50, %51 : vector<1x128xi32>
    %cst_18 = arith.constant 0.000000e+00 : f32
    %53 = vector.broadcast %49 : f32 to vector<1x128xf32>
    %54 = vector.broadcast %cst_18 : f32 to vector<1x128xf32>
    %55 = arith.select %52, %53, %54 : vector<1x128xi1>, vector<1x128xf32>
    %c0_19 = arith.constant 0 : index
    %c0_20 = arith.constant 0 : index
    %56 = vector.load %arg5[%c0_19, %c0_20] : memref<1x128xf32, #tpu.memory_space<vmem>>, vector<1x128xf32>
    tpu.vector_store %arg5[%c0_19, %c0_20], %55 {strides = array<i32>} : memref<1x128xf32, #tpu.memory_space<vmem>>, vector<1x128xf32>,
    return
  }
  func.func @transform_0(%arg0: i32) -> (i32, i32) {
    %c0_i32 = arith.constant 0 : i32
    %c0_i32_0 = arith.constant 0 : i32
    return %c0_i32, %arg0 : i32, i32
  }
  func.func @transform_1(%arg0: i32) -> (i32, i32) {
    %c0_i32 = arith.constant 0 : i32
    %c0_i32_0 = arith.constant 0 : i32
    return %c0_i32, %arg0 : i32, i32
  }
  func.func @transform_2(%arg0: i32) -> (i32, i32) {
    %c0_i32 = arith.constant 0 : i32
    %c0_i32_0 = arith.constant 0 : i32
    %c0_i32_1 = arith.constant 0 : i32
    return %c0_i32, %c0_i32_0 : i32, i32
  }
  func.func @transform_3(%arg0: i32) -> (i32, i32) {
    %c0_i32 = arith.constant 0 : i32
    %c0_i32_0 = arith.constant 0 : i32
    %c0_i32_1 = arith.constant 0 : i32
    return %c0_i32, %c0_i32_0 : i32, i32
  }
  func.func @transform_4(%arg0: i32) -> (i32, i32) {
    %c0_i32 = arith.constant 0 : i32
    %c0_i32_0 = arith.constant 0 : i32
    return %c0_i32, %arg0 : i32, i32
  }
}

</mosaic_0001>

<bundles_post_ra>
// kernel: tpu_custom_call.1
= control target key start
LH: loop header
LB: loop body
LE: loop exit
PB: predicated region body
PF: predicated region fallthrough
CT: control target
= control target key end

     0   :  { %9 = vsyncpa [#allocation3], 0  ;;  %s840_s0 = inlined_call_operand.hbm [shape: f32[5,200], index: 0, kind: input, shape index: {}]   ;;  %s841_s1 = inlined_call_operand.vmem [shape: s32[2,200], index: 1, kind: input, shape index: {}]   ;;  %s842_s2 = inlined_call_operand.vmem [shape: f32[1,3], index: 2, kind: input, shape index: {}]   ;;  %s843_s3 = inlined_call_operand.vmem [shape: f32[5,1], index: 3, kind: input, shape index: {}]   ;;  %s844_s4 = inlined_call_operand.hbm [shape: f32[1,256], index: 4, kind: output, shape index: {}]  }
   0x1   :  { %11 = vsyncpa [#allocation3 + $0x1], 0 }
   0x2   :  { %12 = vsyncpa [#allocation5], 0 }
   0x3   :  { %13 = vsyncpa [#allocation4], 0 }
   0x4   :  { %15 = vsyncpa [#allocation4 + $0x1], 0  ;;  %s655_s15 = smov 0   ;;  %s657_s16 = smov 0  }
   0x5   :  { %s659_s17 = smov 0   ;;  %s661_s18 = smov 0  }
   0x6 LB: > { %s676_s19 = sadd.s32 4294967295, %s624_s18   ;;  %s430_s20 = sadd.s32 4294967294, %s624_s18   ;;  %s624_s18 = sphi %s661_s18, %s867_s18   ;;  %s620_s17 = sphi %s659_s17, %s866_s17   ;;  %s616_s16 = sphi %s657_s16, %s865_s16   ;;  %s612_s15 = sphi %s655_s15, %s864_s15  }
   0x7   : > { %p41_p0 = scmp.ne.s32.totalorder %s616_s16, %s612_s15  ;;  %p845_p1 = scmp.eq.s32.totalorder %s676_s19, 0 }
   0x8   : > { %p139_p3 = scmp.eq.s32.totalorder %s430_s20, 1  ;;  %p431_p5 = scmp.ge.s32.totalorder %s624_s18, 1 }
   0x9   : > { %p685_p4 = por %p845_p1, %p41_p0  ;;  %p146_p7 = scmp.lt.s32.totalorder %s624_s18, 3 }
   0xa   : > { %p690_p6 = por %p139_p3, %p41_p0  ;;  %s159_s25 = sshll.u32 %s842_s2, 4  ;;  %s160_s25 = int_to_ptr.vmem [resolvable:$true] %s159_s25 }
   0xb   : > { %s849_s21 = scalar_select %p685_p4, 1, 0 }
   0xc   : > { %s850_s22 = scalar_select %p690_p6, 1, 0 }
   0xd   : > { %p698_p8 = pnand %p431_p5, %p146_p7  ;;  %s706_s27 = sadd.s32 1, %s624_s18  }
   0xe   : > { %s25_s29 = ssub.s32 %s624_s18, %s706_s27  ;;  %s28_s5 = sadd.s32 1, %s620_s17 }
   0xf   : > { %s851_s26 = scalar_select %p698_p8, 1, 0 }
  0x10   : > { %p458_p10 = pneg %p698_p8  ;;  %p716_p12 = scmp.eq.s32.totalorder %s25_s29, 0 }
  0x11   : > { %p35_p13 = scmp.ne.s32.totalorder %s620_s17, %s616_s16  ;;  %s513_s6 = scalar_lea.vmem %s160_s25, 16 }
  0x12   : > { %p710_p11 = pnand %p458_p10, %p845_p1  ;;  %p514_p0 = scmp.ne.s32.totalorder %s160_s25, %s513_s6 }
  0x13   : > { %p521_p9 = scmp.lt.s32.totalorder %s160_s25, %s160_s25  ;;  %p522_p2 = scmp.lt.s32.totalorder %s513_s6, %s513_s6 }
  0x14   : > { %p515_p3 = pneg %p710_p11 }
  0x15   : > { %p523_p10 = por %p522_p2, %p521_p9 }
  0x16   : > { %p516_p5 = pnand %p515_p3, %p514_p0 }
  0x18   : > { %p517_p7 = pneg %p516_p5 }
  0x1a   : > { %p524_p1 = pnand %p523_p10, %p517_p7 }
  0x1c   : > { %527 = shalt.err (!%p524_p1)
}
  0x1d   : > { %s626_s7 = smov [#allocation6]   ;;  %p36_p2 = scmp.eq.s32.totalorder %s624_s18, 0 }
  0x1e   : > { %461 = dma.vmem_to_smem (!%p710_p11), %s160_s25, 16, %s626_s7, [#allocation5]  }
  0x1f   : > { %s730_s8 = scalar_select %p716_p12, %s620_s17, %s28_s5  }
  0x20   : > { %p854_p1 = scmp.eq.s32.totalorder %s676_s19, 1  ;;  %p471_p0 = scmp.lt.s32.totalorder %s624_s18, 2 }
  0x21   : > { %s173_s10 = sand.u32 1, %s620_s17   ;;  %p37_p3 = por %p36_p2, %p35_p13 }
  0x22   : > { %p738_p9 = por %p854_p1, %p35_p13  ;;  %s434_s11 = sshll.u32 %s173_s10, 3 }
  0x23   : > { %s435_s12 = sshll.u32 %s624_s18, 7  ;;  %s177_s23 = scalar_lea.vmem [#allocation2], %s434_s11 }
  0x24   : > { %s855_s9 = scalar_select %p738_p9, 1, 0 }
  0x25   : > { %s751_s20 = scalar_lea.hbm %s840_s0, %s435_s12  ;;  %s184_s24 = sshll.u32 %s177_s23, 4  ;;  %s185_s24 = int_to_ptr.vmem [resolvable:$true] %s184_s24 }
  0x26   : > { %p753_p11 = pnand %p471_p0, %p37_p3  ;;  %s174_s28 = scalar_lea.sflag [#allocation3], %s173_s10 }
  0x27   : > { %s528_s29 = scalar_lea.hbm %s751_s20, 128  ;;  %s533_s6 = scalar_lea.hbm %s840_s0, 256 }
  0x28   : > { %p529_p12 = scmp.ne.s32.totalorder %s751_s20, %s528_s29  ;;  %p530_p13 = pneg %p753_p11 }
  0x29   : > { %p534_p10 = scmp.lt.s32.totalorder %s751_s20, %s840_s0  ;;  %p535_p2 = scmp.lt.s32.totalorder %s533_s6, %s528_s29 }
  0x2a   : > { %p531_p5 = pnand %p530_p13, %p529_p12 }
  0x2b   : > { %p536_p1 = por %p535_p2, %p534_p10 }
  0x2c   : > { %p532_p7 = pneg %p531_p5 }
  0x2e   : > { %p537_p0 = pnand %p536_p1, %p532_p7 }
  0x30   : > { %540 = shalt.err (!%p537_p0)
}
  0x31   : > { %s541_s12 = scalar_lea.vmem %s185_s24, 128  ;;  %s627_s10 = smov [#allocation2]  }
  0x32   : > { %p542_p3 = scmp.ne.s32.totalorder %s185_s24, %s541_s12  ;;  %s546_s13 = sshll.u32 %s627_s10, 4  ;;  %s547_s13 = int_to_ptr.vmem [resolvable:$false] %s546_s13 }
  0x33   : > { %s548_s14 = scalar_lea.vmem %s547_s13, 256  ;;  %p549_p12 = scmp.lt.s32.totalorder %s185_s24, %s547_s13 }
  0x34   : > { %p544_p6 = pnand %p542_p3, %p530_p13  ;;  %p550_p5 = scmp.lt.s32.totalorder %s548_s14, %s541_s12 }
  0x36   : > { %p545_p9 = pneg %p544_p6  ;;  %p551_p4 = por %p550_p5, %p549_p12 }
  0x38   : > { %p552_p8 = pnand %p551_p4, %p545_p9 }
  0x3a   : > { %555 = shalt.err (!%p552_p8)
}
  0x3b   : > { %465 = dma.hbm_to_vmem [thread:$0]  (!%p753_p11), %s751_s20, 128, %s185_s24, %s174_s28  }
  0x3c   : > { %p857_p7 = scmp.ne.s32.totalorder %s851_s26, 0 }
  0x3d   : > { %s774_s23 = sand.u32 (!%p857_p7), 1, %s616_s16   ;;  %p858_p6 = scmp.ne.s32.totalorder (!%p857_p7), %s849_s21, 0 }
  0x3e   : > { %200 = sbr.rel (%p857_p7) target bundleno = 434 (0x1b2), region = 36  ;;  %s437_s29 = sshll.u32 (!%p857_p7), %s774_s23, 3 }
  0x3f   : > { %s203_s30 = scalar_lea.sflag (!%p857_p7), [#allocation3], %s774_s23  ;;  %s206_s5 = scalar_lea.vmem (!%p857_p7), [#allocation2], %s437_s29 }
  0x43   : > { %599 = dma.done.wait (%p858_p6), %s203_s30, 128  }
  0x44   : > { %601 = vsyncadd (%p858_p6), %s203_s30, 4294967168  ;;  %p859_p4 = scmp.eq.s32.totalorder %s676_s19, 0 }
  0x46   : > { %603 = dma.done.wait (%p859_p4), [#allocation5], 16   ;;  %p860_p8 = pmov %p859_p4 }
  0x48   : > { %605 = vsyncadd (%p860_p8), [#allocation5], 4294967280 }
  0x49   : > { %215 = sfence }
  0x4a   : > { %v290_v0 = vld [vmem:[%s843_s3] sm:$0x1f]  ;;  %v628_v1 = vmov 0   ;;  %vm268_vm0 = vcmask 1044480   ;;  %p239_p9 = scmp.lt.s32.totalorder %s676_s19, 1  ;;  %s244_s25 = sld [smem:[#allocation6]]  ;;  %v246_v20 = vlaneseq }
  0x4b   : > { %508 = vset.pattern.permute.xlu0 %v628_v1  ;;  %v243_v2 = vld [vmem:[%s206_s5] sm:$0x1f]  ;;  %s440_s11 = sld [smem:[#allocation6 + $0x2]]  ;;  %s444_s10 = sshll.u32 %s676_s19, 7  ;;  %vm312_vm4 = vcmask 1040384  }
  0x4c   : > { %293 = vperm.xlu0 %508, %v290_v0   ;;  %v269_v3 = vsel %vm268_vm0, %v243_v2, -inf  ;;  %s240_s21 = scalar_select %p239_p9, %s676_s19, 1  ;;  %v247_v21 = vshrl.u32 %v246_v20, 7  ;;  %v306_v40 = vand.u32 127, %v246_v20  ;;  %v308_v42 = vstv %s444_s10 }
  0x4d   : > { %v270_v4 = vrot.slane %v269_v3, 4  ;;  %s442_s12 = sld [smem:[#allocation6 + $0x1]]  ;;  %s445_s13 = sshll.u32 %s676_s19, 4 }
  0x4e   : > { %s439_s24 = sshll.u32 %s240_s21, 1  ;;  %v309_v44 = vadd.s32 %v308_v42, %v306_v40  ;;  %s238_s14 = scalar_lea.vmem [#allocation7], %s774_s23  ;;  %vm323_vm5 = vcmp.eq.s32.totalorder %v306_v40, 0 }
  0x4f   : > { %v271_v5 = vmax.f32 %v269_v3, %v270_v4  ;;  %s242_s7 = scalar_lea.vmem %s841_s1, %s439_s24  ;;  %s340_s29 = sshll.u32 %s238_s14, 4  ;;  %s341_s29 = int_to_ptr.vmem [resolvable:$true] %s340_s29 }
  0x50   : > { %v441_v22 = vld [vmem:[%s242_s7] ss:$0 sm:$0xff]  ;;  %v254_v23 = vstv %s244_s25  ;;  %v443_v24 = vld [vmem:[%s242_s7 + $0x1] ss:$0 sm:$0xff]  ;;  %vm310_vm3 = vcmp.lt.s32.totalorder %v309_v44, 200  ;;  %s803_s20 = scalar_lea.hbm %s844_s4, %s445_s13  ;;  %s328_s21 = scalar_lea.sflag [#allocation4], %s774_s23 }
  0x51   : > { %v272_v6 = vrot.slane %v271_v5, 2  ;;  %vm253_vm1 = vcmp.eq.s32.totalorder %v247_v21, %v441_v22  ;;  %v256_v27 = vstv %s440_s11  ;;  %vm264_vm2 = vcmp.eq.s32.totalorder %v247_v21, %v443_v24  ;;  %s556_s24 = scalar_lea.vmem %s341_s29, 16  ;;  %p861_p13 = scmp.ne.s32.totalorder %s855_s9, 0 }
  0x52   : > { %v255_v26 = vsel %vm253_vm1, %v254_v23, 0.0  ;;  %p557_p11 = scmp.ne.s32.totalorder %s341_s29, %s556_s24  ;;  %s629_s19 = smov [#allocation7]  }
  0x53   : > { %v273_v7 = vmax.f32 %v271_v5, %v272_v6  ;;  %v265_v28 = vstv %s442_s12  ;;  %v257_v29 = vadd.f32 %v256_v27, %v255_v26  ;;  %s560_s25 = sshll.u32 %s629_s19, 4  ;;  %s561_s25 = int_to_ptr.vmem [resolvable:$false] %s560_s25 }
  0x54   : > { %v266_v31 = vsel %vm264_vm2, %v265_v28, 0.0  ;;  %p558_p10 = pnand %p557_p11, %p861_p13  ;;  %s562_s28 = scalar_lea.vmem %s561_s25, 32 }
  0x55   : > { %v274_v8 = vrot.slane %v273_v7, 1  ;;  %v267_v32 = vadd.f32 %v266_v31, %v257_v29  ;;  %p563_p1 = scmp.lt.s32.totalorder %s341_s29, %s561_s25  ;;  %p564_p0 = scmp.lt.s32.totalorder %s562_s28, %s556_s24 }
  0x56   : > { %p559_p2 = pneg %p558_p10 }
  0x57   : > { %v275_v9 = vmax.f32 %v273_v7, %v274_v8  ;;  %p565_p3 = por %p564_p0, %p563_p1 }
  0x59   : > { %v276_v10 = vsub.f32 %v243_v2, %v275_v9  ;;  %p566_p12 = pnand %p565_p3, %p559_p2 }
  0x5b   : > { %v277_v11 = vmul.f32 1.442695, %v276_v10 }
  0x5d   : > { %509 = vpow2.f32 %v277_v11 }
  0x6a   : > { %v510_v12 = vpop.eup %509 }
  0x6b   : > { %v279_v13 = vsel %vm268_vm0, %v510_v12, 0.0 }
  0x6c   : > { %v280_v14 = vrot.slane %v279_v13, 4 }
  0x6e   : > { %v281_v15 = vadd.f32 %v280_v14, %v279_v13 }
  0x70   : > { %v282_v16 = vrot.slane %v281_v15, 2 }
  0x72   : > { %v283_v17 = vadd.f32 %v282_v16, %v281_v15 }
  0x74   : > { %v284_v18 = vrot.slane %v283_v17, 1 }
  0x76   : > { %v285_v19 = vadd.f32 %v284_v18, %v283_v17 }
  0x78   : > { %511 = vlog2.f32 %v285_v19 }
  0x85   : > { %v512_v25 = vpop.eup %511 }
  0x86   : > { %v287_v30 = vmul.f32 0.6931472, %v512_v25 }
  0x88   : > { %v288_v33 = vsub.f32 %v276_v10, %v287_v30 }
  0x8a   : > { %v289_v34 = vmul.f32 %v288_v33, %v267_v32 }
  0xc7   : > { %v294_v35 = vpop.permute.xlu0 %293 }
  0xc8   : > { %v296_v36 = vmul.f32 %v294_v35, %v289_v34 }
  0xca   : > { %v297_v37 = vsel %vm268_vm0, %v296_v36, 0.0 }
  0xcb   : > { %v298_v38 = vrot.slane %v297_v37, 4 }
  0xcd   : > { %v299_v39 = vadd.f32 %v298_v38, %v297_v37 }
  0xcf   : > { %v300_v41 = vrot.slane %v299_v39, 2 }
  0xd1   : > { %v301_v43 = vadd.f32 %v300_v41, %v299_v39 }
  0xd3   : > { %v302_v45 = vrot.slane %v301_v43, 1 }
  0xd5   : > { %v303_v46 = vadd.f32 %v302_v45, %v301_v43 }
  0xd7   : > { %v304_v47 = vsub.f32 0.0, %v303_v46 }
  0xd9   : > { %v311_v48 = vsel %vm310_vm3, %v304_v47, 0.0 }
  0xda   : > { %v313_v49 = vsel %vm312_vm4, %v311_v48, 0.0 }
  0xdb   : > { %314 = vadd.xlane.f32.xlu0 %v313_v49 }
 0x164   : > { %v315_v50 = vpop.xlane.xlu0 %314 }
 0x165   : > { %v316_v51 = vrot.slane %v315_v50, 4 }
 0x167   : > { %v317_v52 = vadd.f32 %v316_v51, %v315_v50 }
 0x169   : > { %v318_v53 = vrot.slane %v317_v52, 2 }
 0x16b   : > { %v319_v54 = vadd.f32 %v318_v53, %v317_v52 }
 0x16d   : > { %v320_v55 = vrot.slane %v319_v54, 1 }
 0x16f   : > { %v321_v56 = vadd.f32 %v320_v55, %v319_v54 }
 0x171   : > { %448 = vpush %v321_v56 }
 0x1a2   : > { %s449_s30 = spop %448 }
 0x1a3   : > { %v324_v57 = vstv %s449_s30 }
 0x1a4   : > { %v325_v58 = vsel %vm323_vm5, %v324_v57, 0.0 }
 0x1a5   : > { %326 = vst [vmem:[%s238_s14] sm:$0x1] %v325_v58 }
 0x1a6   : > { %569 = shalt.err (!%p566_p12)
}
 0x1a7   : > { %s570_s6 = scalar_lea.hbm %s803_s20, 16  ;;  %s574_s11 = scalar_lea.hbm %s844_s4, 32 }
 0x1a8   : > { %p571_p5 = scmp.ne.s32.totalorder %s803_s20, %s570_s6  ;;  %p575_p4 = scmp.lt.s32.totalorder %s803_s20, %s844_s4 }
 0x1a9   : > { %p576_p8 = scmp.lt.s32.totalorder %s574_s11, %s570_s6 }
 0x1aa   : > { %p572_p7 = pnand %p571_p5, %p861_p13 }
 0x1ab   : > { %p577_p9 = por %p576_p8, %p575_p4 }
 0x1ac   : > { %p573_p6 = pneg %p572_p7 }
 0x1ae   : > { %p578_p11 = pnand %p577_p9, %p573_p6 }
 0x1b0   : > { %581 = shalt.err (!%p578_p11)
}
 0x1b1   : > { %456 = dma.vmem_to_hbm [thread:$0]  (%p861_p13), %s341_s29, 16, %s803_s20, %s328_s21  }
 0x1b2 PF: > { %s352_s13 = sand.u32 1, %s612_s15   ;;  %p862_p10 = scmp.ne.s32.totalorder %s850_s22, 0 }
 0x1b3   : > { %p863_p2 = scmp.ge.s32.totalorder %s624_s18, 2  ;;  %s353_s14 = scalar_lea.sflag [#allocation4], %s352_s13 }
 0x1b5   : > { %p467_p1 = pnand %p863_p2, %p862_p10 }
 0x1b7   : > { %p468_p0 = pneg %p467_p1 }
 0x1b9   : > { %607 = dma.done.wait (%p468_p0), %s353_s14, 16  }
 0x1ba   : > { %609 = vsyncadd (%p468_p0), %s353_s14, 4294967280  ;;  %p18_p3 = scmp.ge.s32.totalorder %s706_s27, 4   ;;  %s864_s15 = smov %s616_s16 }
 0x1bb   : > { %s865_s16 = smov %s620_s17  ;;  %s866_s17 = smov %s730_s8 }
 0x1bc   : > { %s867_s18 = smov %s706_s27  ;;  %20 = sbr.rel (!%p18_p3) target bundleno = 6 (0x6), region = 89 }
 0x1c1   :  { %357 = vsyncpa [#allocation3], 1 }
 0x1c2   :  { %359 = vsyncpa [#allocation3 + $0x1], 1 }
 0x1c3   :  { %360 = vsyncpa [#allocation4], 1 }
 0x1c4   :  { %362 = vsyncpa [#allocation4 + $0x1], 1 }
 0x1c5   :  { %363 = vsyncpa [#allocation5], 1 }
 0x1c6   :  { %365 = vsyncpa [#allocation5 + $0x1], 1 }

</bundles_post_ra>
